<compile_context>
chip_gen: v7x
topology: tpu7x:2x2x1
jax: 0.10.0
libtpu: 0.0.40
codegen_flags: <defaults>
</compile_context>

<pallas_src>
import functools

import jax
import jax.numpy as jnp
from jax.experimental import pallas as pl
from jax.experimental.pallas import tpu as pltpu


def _round_up(x: int, m: int) -> int:
    return ((x + m - 1) // m) * m


def _vmem_defaults():
    """Per-generation tile / scoped-VMEM budgets."""
    kind = ""
    try:
        kind = jax.devices()[0].device_kind.lower()
    except Exception:
        pass
    if "v7" in kind or "7x" in kind:
        # v7x: 64 MiB VMEM per TensorCore -> smaller working set, modest cap.
        return {"tile_budget": 6 << 20, "vmem_cap": 40 << 20, "max_rows": 4096}
    # v5e / v6e: 128 MiB VMEM -> larger tiles amortize per-grid-step overhead.
    return {"tile_budget": 16 << 20, "vmem_cap": 64 << 20, "max_rows": 8192}


def _focal_loss_kernel(logits_ref, labels_ref, *refs, gamma: float,
                       block_rows: int, n_rows: int, per_sample: bool,
                       has_alpha: bool, has_tail: bool):
    if has_alpha:
        alpha_ref, out_ref = refs
    else:
        (out_ref,) = refs

    logits = logits_ref[...].astype(jnp.float32)            # (bn, C)
    labels = labels_ref[...]                                 # (bn, 1) int32

    # Numerically stable logsumexp over the class axis (no full logp tensor).
    m = jnp.max(logits, axis=-1, keepdims=True)              # (bn, 1)
    z = logits - m                                            # (bn, C)
    lse = jnp.log(jnp.sum(jnp.exp(z), axis=-1, keepdims=True))  # (bn, 1)

    # One-hot via iota compare (no gather on TPU), kept as bool for the select.
    cls_ids = jax.lax.broadcasted_iota(jnp.int32, logits.shape, 1)
    hit = cls_ids == labels                                   # (bn, C) bool

    if has_alpha:
        alpha = alpha_ref[...].astype(jnp.float32)            # (1, C)
        # ce = alpha[y] * (lse - z[y]) — single fused masked reduction.
        ce = jnp.sum(jnp.where(hit, alpha * (lse - z), 0.0),
                     axis=-1, keepdims=True)                   # (bn, 1)
    else:
        # Default path (alpha=None): no alpha multiply at all.
        z_y = jnp.sum(jnp.where(hit, z, 0.0), axis=-1, keepdims=True)
        ce = lse - z_y                                         # (bn, 1)

    # NOTE: pt uses the alpha-weighted ce — intentional parity with the module.
    pt = jnp.exp(-ce)
    one_m_pt = 1.0 - pt
    g = float(gamma)
    if g == 2.0:                       # module default: two cheap VPU multiplies
        mod = one_m_pt * one_m_pt
    elif g == 1.0:
        mod = one_m_pt
    elif g == 0.0:
        mod = jnp.ones_like(one_m_pt)
    else:
        mod = one_m_pt ** g
    focal = mod * ce                                           # (bn, 1)

    if has_tail:
        # Padded tail rows may hold garbage (NaN/Inf after exp/log): *select*
        # them away (never multiply by a mask) before anything is stored/summed.
        row = jax.lax.broadcasted_iota(jnp.int32, (block_rows, 1), 0)
        valid = (pl.program_id(0) * block_rows + row) < n_rows
        focal = jnp.where(valid, focal, 0.0)

    if per_sample:
        # Lane-dense per-sample output: one aligned (8, block_rows//8) tile per
        # grid block; row-major order is preserved so the wrapper just flattens.
        out_ref[...] = focal.reshape(8, block_rows // 8)
    else:
        # One partial sum per grid block in an aligned (8, 1) tile; keeps the
        # grid axis "parallel" (final reduce is a tiny op in the wrapper).
        block_sum = jnp.sum(focal)
        r8 = jax.lax.broadcasted_iota(jnp.int32, (8, 1), 0)
        out_ref[...] = jnp.where(r8 == 0, block_sum, 0.0)


def focal_loss(logits, labels, alpha=None, gamma: float = 2.0,
               reduction: str = "mean", block_rows: int | None = None):
    """Pallas TPU implementation of FocalLoss.forward(logits, labels)."""
    logits = jnp.asarray(logits)                 # keep caller dtype (bf16 ok)
    n, c = logits.shape
    has_alpha = alpha is not None
    labels2 = jnp.asarray(labels, jnp.int32).reshape(n, 1)

    cfg = _vmem_defaults()
    itemsize = jnp.dtype(logits.dtype).itemsize
    # Working-set bytes per row: double-buffered logits input, ~4 live (bn,C)
    # f32 intermediates (kernel promotes to f32 — bf16 inputs must not
    # under-budget), plus the lane-padded labels tile (2 buffers x 512 B).
    bytes_per_row = 2 * c * itemsize + 4 * c * 4 + 2 * 128 * 4
    if block_rows is None:
        block_rows = min(cfg["max_rows"],
                         max(8, cfg["tile_budget"] // bytes_per_row))
    block_rows = max(8, (int(block_rows) // 8) * 8)
    block_rows = min(block_rows, _round_up(n, 8))

    num_blocks = (n + block_rows - 1) // block_rows
    per_sample = reduction not in ("mean", "sum")
    has_tail = (n % block_rows) != 0

    kernel = functools.partial(
        _focal_loss_kernel, gamma=float(gamma), block_rows=block_rows,
        n_rows=n, per_sample=per_sample, has_alpha=has_alpha,
        has_tail=has_tail)

    operands = [logits, labels2]
    in_specs = [
        pl.BlockSpec((block_rows, c), lambda i: (i, 0)),   # logits
        pl.BlockSpec((block_rows, 1), lambda i: (i, 0)),   # labels
    ]
    if has_alpha:
        operands.append(jnp.asarray(alpha, jnp.float32).reshape(1, c))
        in_specs.append(pl.BlockSpec((1, c), lambda i: (0, 0)))   # alpha

    if per_sample:
        w = block_rows // 8
        out_shape = jax.ShapeDtypeStruct((num_blocks * 8, w), jnp.float32)
        out_spec = pl.BlockSpec((8, w), lambda i: (i, 0))
    else:
        out_shape = jax.ShapeDtypeStruct((num_blocks * 8, 1), jnp.float32)
        out_spec = pl.BlockSpec((8, 1), lambda i: (i, 0))

    vmem_limit = int(min(cfg["vmem_cap"],
                         max(24 << 20, 2 * block_rows * bytes_per_row)))

    out = pl.pallas_call(
        kernel,
        out_shape=out_shape,
        grid_spec=pltpu.PrefetchScalarGridSpec(
            num_scalar_prefetch=0,
            grid=(num_blocks,),
            in_specs=in_specs,
            out_specs=out_spec,
        ),
        compiler_params=pltpu.CompilerParams(
            dimension_semantics=("parallel",),
            vmem_limit_bytes=vmem_limit),
    )(*operands)

    if reduction == "mean":
        return jnp.sum(out) / n
    elif reduction == "sum":
        return jnp.sum(out)
    else:  # 'none': blocks are stored row-major, so a flat slice recovers order
        return out.reshape(-1)[:n]


def _focal_loss_ref(logits, labels, alpha=None, gamma=2.0, reduction="mean"):
    """Pure-JAX reference for validation."""
    n, c = logits.shape
    if alpha is None:
        alpha = jnp.ones((c,), jnp.float32)
    alpha = jnp.asarray(alpha, jnp.float32)
    labels = jnp.asarray(labels, jnp.int32)
    logp = jax.nn.log_softmax(logits.astype(jnp.float32), axis=-1)
    logp_y = jnp.take_along_axis(logp, labels[:, None], axis=-1)[:, 0]
    ce = -alpha[labels] * logp_y
    pt = jnp.exp(-ce)
    focal = (1.0 - pt) ** gamma * ce
    if reduction == "mean":
        return focal.mean()
    elif reduction == "sum":
        return focal.sum()
    return focal


if __name__ == "__main__":
    key = jax.random.PRNGKey(0)
    k1, k2, k3, k4 = jax.random.split(key, 4)

    # Case 1: module defaults (alpha=None, gamma=2.0, reduction='mean'), f32.
    N, C = 8, 8
    logits = jax.random.normal(k1, (N, C), dtype=jnp.float32)
    labels = jax.random.randint(k2, (N,), 0, C, dtype=jnp.int32)
    out = jax.block_until_ready(focal_loss(logits, labels))
    ref = _focal_loss_ref(logits, labels)
    assert jnp.abs(out - ref) < 1e-5, (out, ref)

    # Case 2: bf16 logits, non-uniform alpha, N not a multiple of the row tile.
    N2, C2 = 20, 16
    logits2 = jax.random.normal(k3, (N2, C2), dtype=jnp.bfloat16)
    labels2 = jax.random.randint(k4, (N2,), 0, C2, dtype=jnp.int32)
    alpha2 = jnp.linspace(0.5, 1.5, C2, dtype=jnp.float32)

    for red in ("mean", "sum", "none"):
        want = _focal_loss_ref(logits2, labels2, alpha=alpha2, gamma=2.0,
                               reduction=red)
        # Forced small tile -> grid of 3 blocks with a masked tail block.
        got = jax.block_until_ready(
            focal_loss(logits2, labels2, alpha=alpha2, gamma=2.0,
                       reduction=red, block_rows=8))
        assert jnp.allclose(got, want, atol=1e-5, rtol=1e-5), (red, got, want)
        # Auto tile -> single block, lane-dense (8, W) per-sample layout.
        got2 = jax.block_until_ready(
            focal_loss(logits2, labels2, alpha=alpha2, gamma=2.0,
                       reduction=red))
        assert jnp.allclose(got2, want, atol=1e-5, rtol=1e-5), (red, got2, want)

    print("KERNEL_OK")
</pallas_src>

<mosaic_0001>
module attributes {stable_mosaic.version = 11 : i64} {
  func.func @_focal_loss_kernel(%arg0: i32, %arg1: memref<8x8xf32, #tpu.memory_space<vmem>>, %arg2: memref<8x1xi32, #tpu.memory_space<vmem>>, %arg3: memref<8x1xf32, #tpu.memory_space<vmem>>) attributes {dimension_semantics = [#tpu.dimension_semantics<parallel>], iteration_bounds = array<i64: 1>, scalar_prefetch = 0 : i64, scratch_operands = 0 : i64, tpu.core_type = #tpu.core_type<tc>, window_params = [{transform_indices = @transform_0, window_bounds = array<i64: 8, 8>}, {transform_indices = @transform_1, window_bounds = array<i64: 8, 1>}, {transform_indices = @transform_2, window_bounds = array<i64: 8, 1>}]} {
    %c0 = arith.constant 0 : index
    %c0_0 = arith.constant 0 : index
    %0 = vector.load %arg1[%c0, %c0_0] : memref<8x8xf32, #tpu.memory_space<vmem>>, vector<8x8xf32>
    %c0_1 = arith.constant 0 : index
    %c0_2 = arith.constant 0 : index
    %1 = vector.load %arg2[%c0_1, %c0_2] : memref<8x1xi32, #tpu.memory_space<vmem>>, vector<8x1xi32>
    %cst = arith.constant dense<0xFF800000> : vector<8xf32>
    %2 = vector.multi_reduction <maximumf>, %0, %cst [1] : vector<8x8xf32> to vector<8xf32>
    %3 = vector.shape_cast %2 : vector<8xf32> to vector<8x1xf32>
    %4 = vector.broadcast %3 : vector<8x1xf32> to vector<8x8xf32>
    %5 = arith.subf %0, %4 : vector<8x8xf32>
    %6 = math.exp %5 : vector<8x8xf32>
    %cst_3 = arith.constant dense<0.000000e+00> : vector<8xf32>
    %7 = vector.multi_reduction <add>, %6, %cst_3 [1] : vector<8x8xf32> to vector<8xf32>
    %8 = vector.shape_cast %7 : vector<8xf32> to vector<8x1xf32>
    %9 = math.log %8 : vector<8x1xf32>
    %10 = tpu.iota {dimensions = array<i32: 1>} : vector<8x8xi32>
    %11 = vector.broadcast %1 : vector<8x1xi32> to vector<8x8xi32>
    %12 = arith.cmpi eq, %10, %11 : vector<8x8xi32>
    %cst_4 = arith.constant 0.000000e+00 : f32
    %13 = vector.broadcast %cst_4 : f32 to vector<8x8xf32>
    %14 = arith.select %12, %5, %13 : vector<8x8xi1>, vector<8x8xf32>
    %cst_5 = arith.constant dense<0.000000e+00> : vector<8xf32>
    %15 = vector.multi_reduction <add>, %14, %cst_5 [1] : vector<8x8xf32> to vector<8xf32>
    %16 = vector.shape_cast %15 : vector<8xf32> to vector<8x1xf32>
    %17 = arith.subf %9, %16 : vector<8x1xf32>
    %cst_6 = arith.constant 0.000000e+00 : f32
    %18 = vector.broadcast %cst_6 : f32 to vector<8x1xf32>
    %19 = arith.subf %18, %17 : vector<8x1xf32>
    %20 = math.exp %19 : vector<8x1xf32>
    %cst_7 = arith.constant 1.000000e+00 : f32
    %21 = vector.broadcast %cst_7 : f32 to vector<8x1xf32>
    %22 = arith.subf %21, %20 : vector<8x1xf32>
    %23 = arith.mulf %22, %22 : vector<8x1xf32>
    %24 = arith.mulf %23, %17 : vector<8x1xf32>
    %25 = vector.shape_cast %24 : vector<8x1xf32> to vector<1x8x1xf32>
    %cst_8 = arith.constant dense<0.000000e+00> : vector<1xf32>
    %26 = vector.multi_reduction <add>, %25, %cst_8 [1, 2] : vector<1x8x1xf32> to vector<1xf32>
    %27 = vector.shape_cast %26 : vector<1xf32> to vector<1x1x1xf32>
    %28 = vector.extract %27[0, 0, 0] : f32 from vector<1x1x1xf32>
    %29 = tpu.iota {dimensions = array<i32: 0>} : vector<8x1xi32>
    %c0_i32 = arith.constant 0 : i32
    %30 = vector.broadcast %c0_i32 : i32 to vector<8x1xi32>
    %31 = arith.cmpi eq, %29, %30 : vector<8x1xi32>
    %cst_9 = arith.constant 0.000000e+00 : f32
    %32 = vector.broadcast %28 : f32 to vector<8x1xf32>
    %33 = vector.broadcast %cst_9 : f32 to vector<8x1xf32>
    %34 = arith.select %31, %32, %33 : vector<8x1xi1>, vector<8x1xf32>
    %c0_10 = arith.constant 0 : index
    %c0_11 = arith.constant 0 : index
    %35 = vector.load %arg3[%c0_10, %c0_11] : memref<8x1xf32, #tpu.memory_space<vmem>>, vector<8x1xf32>
    tpu.vector_store %arg3[%c0_10, %c0_11], %34 {strides = array<i32>} : memref<8x1xf32, #tpu.memory_space<vmem>>, vector<8x1xf32>,
    return
  }
  func.func @transform_0(%arg0: i32) -> (i32, i32) {
    %c0_i32 = arith.constant 0 : i32
    %c0_i32_0 = arith.constant 0 : i32
    return %arg0, %c0_i32 : i32, i32
  }
  func.func @transform_1(%arg0: i32) -> (i32, i32) {
    %c0_i32 = arith.constant 0 : i32
    %c0_i32_0 = arith.constant 0 : i32
    return %arg0, %c0_i32 : i32, i32
  }
  func.func @transform_2(%arg0: i32) -> (i32, i32) {
    %c0_i32 = arith.constant 0 : i32
    %c0_i32_0 = arith.constant 0 : i32
    return %arg0, %c0_i32 : i32, i32
  }
}

</mosaic_0001>

<bundles_post_ra>
// kernel: tpu_custom_call.1
= control target key start
LH: loop header
LB: loop body
LE: loop exit
PB: predicated region body
PF: predicated region fallthrough
CT: control target
= control target key end

     0   :  { %vm13_vm0 = vcmask 64512   ;;  %v73_v1 = vmov 0   ;;  %v25_v7 = vlaneseq  ;;  %vm42_vm2 = vcmask 7168   ;;  %s103_s0 = inlined_call_operand.vmem [shape: f32[8,8], index: 0, kind: input, shape index: {}]   ;;  %s104_s1 = inlined_call_operand.vmem [shape: s32[8,1], index: 1, kind: input, shape index: {}]   ;;  %s105_s2 = inlined_call_operand.vmem [shape: f32[8,1], index: 2, kind: output, shape index: {}]  }
   0x1   :  { %v11_v0 = vld [vmem:[%s103_s0] sm:$0xff]  ;;  %66 = vset.pattern.permute.xlu0 %v73_v1 }
   0x2   :  { %v14_v2 = vsel %vm13_vm0, %v11_v0, -inf  ;;  %v12_v3 = vld [vmem:[%s104_s1] sm:$0xff]  ;;  %v26_v8 = vand.u32 127, %v25_v7  ;;  %v54_v33 = vshrl.u32 %v25_v7, 7 }
   0x3   :  { %15 = vmax.xlane.f32.xlu0 %v14_v2 }
   0x4   :  { %vm55_vm3 = vcmp.eq.s32.totalorder %v54_v33, 0 }
  0x19   :  { %28 = vperm.xlu0 %66, %v12_v3  }
  0x90   :  { %v16_v4 = vpop.xlane.xlu0 %15 }
  0x91   :  { %v17_v5 = vsub.f32 %v11_v0, %v16_v4 }
  0x93   :  { %v18_v6 = vmul.f32 1.442695, %v17_v5 }
  0x95   :  { %67 = vpow2.f32 %v18_v6 }
  0x98   :  { %v29_v9 = vpop.permute.xlu0 %28 }
  0x99   :  { %vm30_vm1 = vcmp.eq.s32.totalorder %v26_v8, %v29_v9 }
  0x9a   :  { %v31_v12 = vsel %vm30_vm1, %v17_v5, 0.0 }
  0x9b   :  { %v32_v13 = vsel %vm13_vm0, %v31_v12, 0.0 }
  0x9f   :  { %v68_v10 = vpop.eup %67 }
  0xa0   :  { %v20_v11 = vsel %vm13_vm0, %v68_v10, 0.0 }
  0xa1   :  { %21 = vadd.xlane.f32.xlu1 %v20_v11 }
  0xa5   :  { %33 = vadd.xlane.f32.xlu1 %v32_v13 }
 0x12e   :  { %v22_v14 = vpop.xlane.xlu1 %21 }
 0x12f   :  { %69 = vlog2.f32 %v22_v14 }
 0x132   :  { %v34_v17 = vpop.xlane.xlu1 %33 }
 0x139   :  { %v70_v15 = vpop.eup %69 }
 0x13a   :  { %v24_v16 = vmul.f32 0.6931472, %v70_v15 }
 0x13c   :  { %v35_v18 = vsub.f32 %v24_v16, %v34_v17 }
 0x13e   :  { %v36_v19 = vsub.f32 0.0, %v35_v18 }
 0x140   :  { %v37_v20 = vmul.f32 1.442695, %v36_v19 }
 0x142   :  { %71 = vpow2.f32 %v37_v20 }
 0x14c   :  { %v72_v21 = vpop.eup %71 }
 0x14d   :  { %v39_v22 = vsub.f32 1.0, %v72_v21 }
 0x14f   :  { %v40_v23 = vmul.f32 %v39_v22, %v39_v22 }
 0x151   :  { %v41_v24 = vmul.f32 %v40_v23, %v35_v18 }
 0x153   :  { %v43_v25 = vsel %vm42_vm2, %v41_v24, 0.0 }
 0x154   :  { %44 = vadd.xlane.f32.xlu1 %v43_v25 }
 0x1e1   :  { %v45_v26 = vpop.xlane.xlu1 %44 }
 0x1e2   :  { %v46_v27 = vrot.slane %v45_v26, 4 }
 0x1e4   :  { %v47_v28 = vadd.f32 %v46_v27, %v45_v26 }
 0x1e6   :  { %v48_v29 = vrot.slane %v47_v28, 2 }
 0x1e8   :  { %v49_v30 = vadd.f32 %v48_v29, %v47_v28 }
 0x1ea   :  { %v50_v31 = vrot.slane %v49_v30, 1 }
 0x1ec   :  { %v51_v32 = vadd.f32 %v50_v31, %v49_v30 }
 0x1ee   :  { %63 = vpush %v51_v32 }
 0x21f   :  { %s64_s0 = spop %63 }
 0x220   :  { %v56_v34 = vstv %s64_s0 }
 0x221   :  { %v57_v35 = vsel %vm55_vm3, %v56_v34, 0.0 }
 0x222   :  { %58 = vst.msk [vmem:[%s105_s2] sm:$0xff] %vm42_vm2, %v57_v35 }

</bundles_post_ra>
